<compile_context>
chip_gen: v7x
topology: tpu7x:2x2x1
jax: 0.10.0
libtpu: 0.0.40
codegen_flags: <defaults>
</compile_context>

<pallas_src>
import jax
import jax.numpy as jnp
from jax.experimental import pallas as pl
from jax.experimental.pallas import tpu as pltpu

H1 = 128       # fc1 width (lane-dense)
H2_PAD = 128   # fc2 width padded 64 -> 128 with zero columns (keeps h2 lane-dense)


def _round_up(x, m):
    return ((x + m - 1) // m) * m


def actor_kernel(x_ref, w1_ref, b1_ref, w2_ref, b2_ref, w3_ref, b3_ref, o_ref):
    """One batch tile of relu(fc1) -> relu(fc2) -> softmax(fc3)."""
    x = x_ref[...].astype(w1_ref.dtype)

    # fc1 + relu : (tb, state_dim) @ (state_dim, 128), f32 accumulate
    h1 = jnp.dot(x, w1_ref[...], preferred_element_type=jnp.float32)
    h1 = jnp.maximum(h1 + b1_ref[...], 0.0)

    # fc2 + relu : (tb, 128) @ (128, 128); padded zero columns stay zero after relu
    h2 = jnp.dot(h1.astype(w2_ref.dtype), w2_ref[...],
                 preferred_element_type=jnp.float32)
    h2 = jnp.maximum(h2 + b2_ref[...], 0.0)

    # fc3 : (tb, 128) @ (128, action_dim); padded w3 rows are zero -> no contribution
    logits = jnp.dot(h2.astype(w3_ref.dtype), w3_ref[...],
                     preferred_element_type=jnp.float32)
    logits = logits + b3_ref[...]

    # Numerically stable softmax (exact divide so rows sum to 1).
    m = jnp.max(logits, axis=-1, keepdims=True)
    e = jnp.exp(logits - m)
    denom = jnp.sum(e, axis=-1, keepdims=True)
    o_ref[...] = (e / denom).astype(o_ref.dtype)


def _choose_tile(batch):
    if batch >= 4096:
        return 2048                                  # amortize per-grid-step overhead
    if batch >= 256:
        # keep >= 2 tiles so ("parallel",) can shard across v7x's 2 TensorCores
        return _round_up(pl.cdiv(batch, 2), 128)
    # single tile; block dim == full array dim is always a legal BlockSpec
    return batch


def actor_forward(state, packed_params, *, tb=None):
    w1, b1, w2, b2, w3, b3 = packed_params
    batch, state_dim = state.shape
    action_dim = w3.shape[1]

    if tb is None:
        tb = _choose_tile(batch)

    grid = (pl.cdiv(batch, tb),)   # ragged last tile handled by Pallas (masked writes)

    def resident(arr):
        # Same block index every grid step -> weight/bias stays resident in VMEM.
        return pl.BlockSpec(arr.shape, lambda i: (0, 0))

    out = pl.pallas_call(
        actor_kernel,
        out_shape=jax.ShapeDtypeStruct((batch, action_dim), jnp.float32),
        grid=grid,
        in_specs=[
            pl.BlockSpec((tb, state_dim), lambda i: (i, 0)),   # streamed activations
            resident(w1), resident(b1),
            resident(w2), resident(b2),
            resident(w3), resident(b3),
        ],
        # Narrow output: last dim == full array dim -> only action_dim f32 per row
        # is DMA'd back to HBM; no wrapper-side slice needed.
        out_specs=pl.BlockSpec((tb, action_dim), lambda i: (i, 0)),
        compiler_params=pltpu.CompilerParams(
            dimension_semantics=("parallel",),   # megacore sharding on v7x
        ),
    )(state, w1, b1, w2, b2, w3, b3)

    return out


def init_params(key, state_dim, action_dim):
    """fp32 params with PyTorch nn.Linear-equivalent shapes, stored as (in, out)."""
    ks = jax.random.split(key, 6)
    w1 = jax.random.normal(ks[0], (state_dim, H1), jnp.float32) * 0.1
    b1 = jax.random.normal(ks[1], (H1,), jnp.float32) * 0.1
    w2 = jax.random.normal(ks[2], (H1, 64), jnp.float32) * 0.1
    b2 = jax.random.normal(ks[3], (64,), jnp.float32) * 0.1
    w3 = jax.random.normal(ks[4], (64, action_dim), jnp.float32) * 0.1
    b3 = jax.random.normal(ks[5], (action_dim,), jnp.float32) * 0.1
    return (w1, b1, w2, b2, w3, b3)


def pack_params(params, *, weight_dtype=jnp.bfloat16):
    """Pad the hidden (64) width to lane-dense 128 and cast weights for the MXU.

    Output width is NOT padded: the kernel writes a narrow (batch, action_dim)
    result directly, so no mask / padded bias is required.
    """
    w1, b1, w2, b2, w3, b3 = params
    h2_raw = w2.shape[1]
    action_dim = w3.shape[1]

    w1p = w1.astype(weight_dtype)
    b1p = b1.reshape(1, H1).astype(jnp.float32)

    w2p = jnp.zeros((H1, H2_PAD), weight_dtype).at[:, :h2_raw].set(
        w2.astype(weight_dtype))
    b2p = jnp.zeros((1, H2_PAD), jnp.float32).at[:, :h2_raw].set(b2)

    w3p = jnp.zeros((H2_PAD, action_dim), weight_dtype).at[:h2_raw, :].set(
        w3.astype(weight_dtype))
    b3p = b3.reshape(1, action_dim).astype(jnp.float32)

    return (w1p, b1p, w2p, b2p, w3p, b3p)


if __name__ == "__main__":
    state_dim = 16
    action_dim = 8
    batch = 4

    key = jax.random.PRNGKey(0)
    k_params, k_state = jax.random.split(key)
    params = init_params(k_params, state_dim, action_dim)
    packed = pack_params(params, weight_dtype=jnp.bfloat16)
    state = jax.random.normal(k_state, (batch, state_dim), jnp.float32)

    probs = actor_forward(state, packed)
    jax.block_until_ready(probs)

    # fp32 reference with the unpadded weights; tolerance covers bf16 weight storage.
    w1, b1, w2, b2, w3, b3 = params
    h1 = jnp.maximum(state @ w1 + b1, 0.0)
    h2 = jnp.maximum(h1 @ w2 + b2, 0.0)
    ref = jax.nn.softmax(h2 @ w3 + b3, axis=-1)

    assert probs.shape == (batch, action_dim)
    assert jnp.allclose(probs, ref, atol=2e-2), "mismatch vs fp32 reference"
    assert jnp.allclose(jnp.sum(probs, axis=-1), 1.0, atol=1e-5)

    print("KERNEL_OK")
</pallas_src>

<mosaic_0001>
module attributes {stable_mosaic.version = 11 : i64} {
  func.func @actor_kernel(%arg0: i32, %arg1: memref<4x16xf32, #tpu.memory_space<vmem>>, %arg2: memref<16x128xbf16, #tpu.memory_space<vmem>>, %arg3: memref<1x128xf32, #tpu.memory_space<vmem>>, %arg4: memref<128x128xbf16, #tpu.memory_space<vmem>>, %arg5: memref<1x128xf32, #tpu.memory_space<vmem>>, %arg6: memref<128x8xbf16, #tpu.memory_space<vmem>>, %arg7: memref<1x8xf32, #tpu.memory_space<vmem>>, %arg8: memref<4x8xf32, #tpu.memory_space<vmem>>) attributes {dimension_semantics = [#tpu.dimension_semantics<parallel>], iteration_bounds = array<i64: 1>, scalar_prefetch = 0 : i64, scratch_operands = 0 : i64, tpu.core_type = #tpu.core_type<tc>, window_params = [{transform_indices = @transform_0, window_bounds = array<i64: 4, 16>}, {pipeline_mode = #tpu.pipeline_mode<synchronous>, transform_indices = @transform_1, window_bounds = array<i64: 16, 128>}, {pipeline_mode = #tpu.pipeline_mode<synchronous>, transform_indices = @transform_2, window_bounds = array<i64: 1, 128>}, {pipeline_mode = #tpu.pipeline_mode<synchronous>, transform_indices = @transform_3, window_bounds = array<i64: 128, 128>}, {pipeline_mode = #tpu.pipeline_mode<synchronous>, transform_indices = @transform_4, window_bounds = array<i64: 1, 128>}, {pipeline_mode = #tpu.pipeline_mode<synchronous>, transform_indices = @transform_5, window_bounds = array<i64: 128, 8>}, {pipeline_mode = #tpu.pipeline_mode<synchronous>, transform_indices = @transform_6, window_bounds = array<i64: 1, 8>}, {transform_indices = @transform_7, window_bounds = array<i64: 4, 8>}]} {
    %c0 = arith.constant 0 : index
    %c0_0 = arith.constant 0 : index
    %0 = vector.load %arg1[%c0, %c0_0] : memref<4x16xf32, #tpu.memory_space<vmem>>, vector<4x16xf32>
    %1 = arith.truncf %0 : vector<4x16xf32> to vector<4x16xbf16>
    %c0_1 = arith.constant 0 : index
    %c0_2 = arith.constant 0 : index
    %2 = vector.load %arg2[%c0_1, %c0_2] : memref<16x128xbf16, #tpu.memory_space<vmem>>, vector<16x128xbf16>
    %cst = arith.constant dense<0.000000e+00> : vector<4x128xf32>
    %3 = tpu.matmul %1, %2, %cst {dimension_numbers = #tpu.dot_dimension_numbers<[1], [0], [0], [1], [0, 0, 1, 1], [], []>} : vector<4x16xbf16>, vector<16x128xbf16>, vector<4x128xf32> -> vector<4x128xf32>
    %c0_3 = arith.constant 0 : index
    %c0_4 = arith.constant 0 : index
    %4 = vector.load %arg3[%c0_3, %c0_4] : memref<1x128xf32, #tpu.memory_space<vmem>>, vector<1x128xf32>
    %5 = vector.broadcast %4 : vector<1x128xf32> to vector<4x128xf32>
    %6 = arith.addf %3, %5 : vector<4x128xf32>
    %cst_5 = arith.constant 0.000000e+00 : f32
    %7 = vector.broadcast %cst_5 : f32 to vector<4x128xf32>
    %8 = arith.maximumf %6, %7 : vector<4x128xf32>
    %9 = arith.truncf %8 : vector<4x128xf32> to vector<4x128xbf16>
    %c0_6 = arith.constant 0 : index
    %c0_7 = arith.constant 0 : index
    %10 = vector.load %arg4[%c0_6, %c0_7] : memref<128x128xbf16, #tpu.memory_space<vmem>>, vector<128x128xbf16>
    %cst_8 = arith.constant dense<0.000000e+00> : vector<4x128xf32>
    %11 = tpu.matmul %9, %10, %cst_8 {dimension_numbers = #tpu.dot_dimension_numbers<[1], [0], [0], [1], [0, 0, 1, 1], [], []>} : vector<4x128xbf16>, vector<128x128xbf16>, vector<4x128xf32> -> vector<4x128xf32>
    %c0_9 = arith.constant 0 : index
    %c0_10 = arith.constant 0 : index
    %12 = vector.load %arg5[%c0_9, %c0_10] : memref<1x128xf32, #tpu.memory_space<vmem>>, vector<1x128xf32>
    %13 = vector.broadcast %12 : vector<1x128xf32> to vector<4x128xf32>
    %14 = arith.addf %11, %13 : vector<4x128xf32>
    %cst_11 = arith.constant 0.000000e+00 : f32
    %15 = vector.broadcast %cst_11 : f32 to vector<4x128xf32>
    %16 = arith.maximumf %14, %15 : vector<4x128xf32>
    %17 = arith.truncf %16 : vector<4x128xf32> to vector<4x128xbf16>
    %c0_12 = arith.constant 0 : index
    %c0_13 = arith.constant 0 : index
    %18 = vector.load %arg6[%c0_12, %c0_13] : memref<128x8xbf16, #tpu.memory_space<vmem>>, vector<128x8xbf16>
    %cst_14 = arith.constant dense<0.000000e+00> : vector<4x8xf32>
    %19 = tpu.matmul %17, %18, %cst_14 {dimension_numbers = #tpu.dot_dimension_numbers<[1], [0], [0], [1], [0, 0, 1, 1], [], []>} : vector<4x128xbf16>, vector<128x8xbf16>, vector<4x8xf32> -> vector<4x8xf32>
    %c0_15 = arith.constant 0 : index
    %c0_16 = arith.constant 0 : index
    %20 = vector.load %arg7[%c0_15, %c0_16] : memref<1x8xf32, #tpu.memory_space<vmem>>, vector<1x8xf32>
    %21 = vector.broadcast %20 : vector<1x8xf32> to vector<4x8xf32>
    %22 = arith.addf %19, %21 : vector<4x8xf32>
    %cst_17 = arith.constant dense<0xFF800000> : vector<4xf32>
    %23 = vector.multi_reduction <maximumf>, %22, %cst_17 [1] : vector<4x8xf32> to vector<4xf32>
    %24 = vector.shape_cast %23 : vector<4xf32> to vector<4x1xf32>
    %25 = vector.broadcast %24 : vector<4x1xf32> to vector<4x8xf32>
    %26 = arith.subf %22, %25 : vector<4x8xf32>
    %27 = math.exp %26 : vector<4x8xf32>
    %cst_18 = arith.constant dense<0.000000e+00> : vector<4xf32>
    %28 = vector.multi_reduction <add>, %27, %cst_18 [1] : vector<4x8xf32> to vector<4xf32>
    %29 = vector.shape_cast %28 : vector<4xf32> to vector<4x1xf32>
    %30 = vector.broadcast %29 : vector<4x1xf32> to vector<4x8xf32>
    %31 = arith.divf %27, %30 : vector<4x8xf32>
    %c0_19 = arith.constant 0 : index
    %c0_20 = arith.constant 0 : index
    %32 = vector.load %arg8[%c0_19, %c0_20] : memref<4x8xf32, #tpu.memory_space<vmem>>, vector<4x8xf32>
    tpu.vector_store %arg8[%c0_19, %c0_20], %31 {strides = array<i32>} : memref<4x8xf32, #tpu.memory_space<vmem>>, vector<4x8xf32>,
    return
  }
  func.func @transform_0(%arg0: i32) -> (i32, i32) {
    %c0_i32 = arith.constant 0 : i32
    %c0_i32_0 = arith.constant 0 : i32
    return %arg0, %c0_i32 : i32, i32
  }
  func.func @transform_1(%arg0: i32) -> (i32, i32) {
    %c0_i32 = arith.constant 0 : i32
    %c0_i32_0 = arith.constant 0 : i32
    %c0_i32_1 = arith.constant 0 : i32
    return %c0_i32, %c0_i32_0 : i32, i32
  }
  func.func @transform_2(%arg0: i32) -> (i32, i32) {
    %c0_i32 = arith.constant 0 : i32
    %c0_i32_0 = arith.constant 0 : i32
    %c0_i32_1 = arith.constant 0 : i32
    return %c0_i32, %c0_i32_0 : i32, i32
  }
  func.func @transform_3(%arg0: i32) -> (i32, i32) {
    %c0_i32 = arith.constant 0 : i32
    %c0_i32_0 = arith.constant 0 : i32
    %c0_i32_1 = arith.constant 0 : i32
    return %c0_i32, %c0_i32_0 : i32, i32
  }
  func.func @transform_4(%arg0: i32) -> (i32, i32) {
    %c0_i32 = arith.constant 0 : i32
    %c0_i32_0 = arith.constant 0 : i32
    %c0_i32_1 = arith.constant 0 : i32
    return %c0_i32, %c0_i32_0 : i32, i32
  }
  func.func @transform_5(%arg0: i32) -> (i32, i32) {
    %c0_i32 = arith.constant 0 : i32
    %c0_i32_0 = arith.constant 0 : i32
    %c0_i32_1 = arith.constant 0 : i32
    return %c0_i32, %c0_i32_0 : i32, i32
  }
  func.func @transform_6(%arg0: i32) -> (i32, i32) {
    %c0_i32 = arith.constant 0 : i32
    %c0_i32_0 = arith.constant 0 : i32
    %c0_i32_1 = arith.constant 0 : i32
    return %c0_i32, %c0_i32_0 : i32, i32
  }
  func.func @transform_7(%arg0: i32) -> (i32, i32) {
    %c0_i32 = arith.constant 0 : i32
    %c0_i32_0 = arith.constant 0 : i32
    return %arg0, %c0_i32 : i32, i32
  }
}

</mosaic_0001>

<bundles_post_ra>
// kernel: tpu_custom_call.1
= control target key start
LH: loop header
LB: loop body
LE: loop exit
PB: predicated region body
PF: predicated region fallthrough
CT: control target
= control target key end

     0   :  { %v477_v1 = vmov 0.0   ;;  %vm478_vm0 = vmmov 0   ;;  %vm45_vm1 = vcmask 130048   ;;  %s618_s0 = inlined_call_operand.vmem [shape: f32[4,16], index: 0, kind: input, shape index: {}]   ;;  %s619_s1 = inlined_call_operand.vmem [shape: bf16[16,128], index: 1, kind: input, shape index: {}]   ;;  %s620_s2 = inlined_call_operand.vmem [shape: f32[1,128], index: 2, kind: input, shape index: {}]   ;;  %s621_s3 = inlined_call_operand.vmem [shape: bf16[128,128], index: 3, kind: input, shape index: {}]   ;;  %s622_s4 = inlined_call_operand.vmem [shape: f32[1,128], index: 4, kind: input, shape index: {}]   ;;  %s623_s5 = inlined_call_operand.vmem [shape: bf16[128,8], index: 5, kind: input, shape index: {}]   ;;  %s624_s6 = inlined_call_operand.vmem [shape: f32[1,8], index: 6, kind: input, shape index: {}]   ;;  %s625_s7 = inlined_call_operand.hbm [shape: f32[4,8], index: 7, kind: output, shape index: {}]  }
   0x1   :  { %v432_v0 = vld [vmem:[%s619_s1] sm:$0xff]   ;;  %383 = vmatprep.subr.bf16.mxu0 %v477_v1  ;;  %389 = vmatprep.subr.bf16.mxu1 %v477_v1  ;;  %v434_v5 = vld [vmem:[%s621_s3 + $0x8] sm:$0xff]   ;;  %v435_v6 = vld [vmem:[%s621_s3 + $0x10] sm:$0xff]  }
   0x2   :  { %v28_v2 = vld [vmem:[%s618_s0] sm:$0xf]  ;;  %384 = vmatpush3.bf16.msra.mxu0 %v432_v0  ;;  %385 = vmatprep.mubr.msk.bf16.mxu0 %vm478_vm0, %v477_v1  ;;  %v436_v7 = vld [vmem:[%s621_s3 + $0x18] sm:$0xff]  }
   0x3   :  { %v29_v3 = vpack.c.bf16 %v28_v2, %v28_v2  ;;  %v433_v4 = vld [vmem:[%s621_s3] sm:$0xff]   ;;  %405 = vmatprep.mubr.msk.bf16.mxu1 %vm478_vm0, %v477_v1  ;;  %409 = vmatprep.subr.bf16.mxu0 %v477_v1 }
   0x4   :  { %390 = vmatpush3.bf16.msra.mxu1 %v433_v4 }
   0x5   :  { %386 = vmatmul.mubr.msk.bf16.vlgmr.msra.gmra.mrb[0].mxu0 %vm45_vm1, %v29_v3  ;;  %391 = vmatprep.subr.bf16.mxu1 %v477_v1 }
   0x6   :  { %425 = vmatprep.mubr.msk.bf16.mxu0 %vm478_vm0, %v477_v1 }
   0x8   :  { %392 = vmatpush3.bf16.msra.mxu1 %v434_v5 }
   0x9   :  { %393 = vmatprep.subr.bf16.mxu1 %v477_v1 }
   0xc   :  { %394 = vmatpush3.bf16.msra.mxu1 %v435_v6 }
   0xd   :  { %395 = vmatprep.subr.bf16.mxu1 %v477_v1 }
   0xe   :  { %12 = vsyncpa [#allocation3], 0  ;;  %v437_v8 = vld [vmem:[%s621_s3 + $0x20] sm:$0xff]   ;;  %v438_v9 = vld [vmem:[%s621_s3 + $0x28] sm:$0xff]   ;;  %vm315_vm2 = vcmask 60416  }
   0xf   :  { %v439_v10 = vld [vmem:[%s621_s3 + $0x30] sm:$0xff]   ;;  %v440_v11 = vld [vmem:[%s621_s3 + $0x38] sm:$0xff]   ;;  %v441_v12 = vld [vmem:[%s623_s5] sm:$0xff]  }
  0x10   :  { %396 = vmatpush3.bf16.msra.mxu1 %v436_v7  ;;  %410 = vmatpush3.bf16.msra.mxu0 %v441_v12  ;;  %v442_v13 = vld [vmem:[%s623_s5 + $0x8] sm:$0xff]   ;;  %v443_v14 = vld [vmem:[%s623_s5 + $0x10] sm:$0xff]   ;;  %v444_v15 = vld [vmem:[%s623_s5 + $0x18] sm:$0xff]  }
  0x11   :  { %397 = vmatprep.subr.bf16.mxu1 %v477_v1  ;;  %411 = vmatprep.subr.bf16.mxu0 %v477_v1  ;;  %v445_v16 = vld [vmem:[%s623_s5 + $0x20] sm:$0xff]   ;;  %v446_v17 = vld [vmem:[%s623_s5 + $0x28] sm:$0xff]   ;;  %v447_v26 = vld [vmem:[%s623_s5 + $0x30] sm:$0xff]  }
  0x12   :  { %v342_v18 = vld [vmem:[%s620_s2] ss:$0 sm:$0xff]  ;;  %v448_v27 = vld [vmem:[%s623_s5 + $0x38] sm:$0xff]  }
  0x13   :  { %v345_v28 = vld [vmem:[%s622_s4] ss:$0 sm:$0xff]  ;;  %s479_s4 = smov [#allocation2]  }
  0x14   :  { %398 = vmatpush3.bf16.msra.mxu1 %v437_v8  ;;  %412 = vmatpush3.bf16.msra.mxu0 %v442_v13  ;;  %v354_v36 = vld [vmem:[%s624_s6] ss:$0 sm:$0xff]  ;;  %s334_s5 = sshll.u32 %s479_s4, 4  ;;  %s335_s5 = int_to_ptr.vmem [resolvable:$true] %s334_s5 }
  0x15   :  { %399 = vmatprep.subr.bf16.mxu1 %v477_v1  ;;  %413 = vmatprep.subr.bf16.mxu0 %v477_v1  ;;  %s453_s6 = scalar_lea.vmem %s335_s5, 64  ;;  %p458_p1 = scmp.lt.s32.totalorder %s335_s5, %s335_s5 }
  0x16   :  { %p454_p0 = scmp.ne.s32.totalorder %s335_s5, %s453_s6  ;;  %p459_p2 = scmp.lt.s32.totalorder %s453_s6, %s453_s6 }
  0x18   :  { %400 = vmatpush3.bf16.msra.mxu1 %v438_v9  ;;  %414 = vmatpush3.bf16.msra.mxu0 %v443_v14  ;;  %p460_p3 = por %p459_p2, %p458_p1 }
  0x19   :  { %401 = vmatprep.subr.bf16.mxu1 %v477_v1  ;;  %415 = vmatprep.subr.bf16.mxu0 %v477_v1 }
  0x1a   :  { %p461_p4 = pnand %p460_p3, %p454_p0 }
  0x1c   :  { %402 = vmatpush3.bf16.msra.mxu1 %v439_v10  ;;  %416 = vmatpush3.bf16.msra.mxu0 %v444_v15 }
  0x1d   :  { %403 = vmatprep.subr.bf16.mxu1 %v477_v1  ;;  %417 = vmatprep.subr.bf16.mxu0 %v477_v1 }
  0x20   :  { %404 = vmatpush3.bf16.msra.mxu1 %v440_v11  ;;  %418 = vmatpush3.bf16.msra.mxu0 %v445_v16 }
  0x21   :  { %419 = vmatprep.subr.bf16.mxu0 %v477_v1 }
  0x24   :  { %420 = vmatpush3.bf16.msra.mxu0 %v446_v17 }
  0x25   :  { %421 = vmatprep.subr.bf16.mxu0 %v477_v1 }
  0x28   :  { %422 = vmatpush3.bf16.msra.mxu0 %v447_v26 }
  0x29   :  { %423 = vmatprep.subr.bf16.mxu0 %v477_v1 }
  0x2c   :  { %424 = vmatpush3.bf16.msra.mxu0 %v448_v27 }
  0xd8   :  { %v83_v19 = vpop.f32.mrb[0].mxu0 }
  0xd9   :  { %v84_v20 = vadd.f32 %v342_v18, %v83_v19  ;;  %v387_v21 = vpop.f32.mrb[1].mxu0 }
  0xda   :  { %v86_v22 = vpop.f32.mrb[2].mxu0 }
  0xdb   :  { %v89_v23 = vmax.f32 %v84_v20, 0.0  ;;  %v388_v24 = vpop.f32.mrb[3].mxu0 }
  0xdd   :  { %v90_v25 = vpack.c.bf16 %v89_v23, %v89_v23 }
  0xdf   :  { %406 = vmatmul.mubr.bf16.vlgmr.msra.gmra.mrb[0].mxu1 %v90_v25 }
 0x1b2   :  { %v196_v29 = vpop.f32.mrb[0].mxu1 }
 0x1b3   :  { %v197_v30 = vadd.f32 %v345_v28, %v196_v29  ;;  %v407_v31 = vpop.f32.mrb[1].mxu1 }
 0x1b4   :  { %v199_v32 = vpop.f32.mrb[2].mxu1 }
 0x1b5   :  { %v202_v33 = vmax.f32 %v197_v30, 0.0  ;;  %v408_v34 = vpop.f32.mrb[3].mxu1 }
 0x1b7   :  { %v203_v35 = vpack.c.bf16 %v202_v33, %v202_v33 }
 0x1b9   :  { %426 = vmatmul.mubr.bf16.vlgmr.msra.gmra.mrb[4].mxu0 %v203_v35 }
 0x28c   :  { %v309_v37 = vpop.f32.mrb[4].mxu0 }
 0x28d   :  { %v310_v38 = vadd.f32 %v354_v36, %v309_v37  ;;  %v427_v39 = vpop.f32.mrb[5].mxu0 }
 0x28e   :  { %v312_v40 = vpop.f32.mrb[6].mxu0 }
 0x28f   :  { %v428_v41 = vpop.f32.mrb[7].mxu0  ;;  %v316_v42 = vsel %vm315_vm2, %v310_v38, -inf }
 0x290   :  { %317 = vmax.xlane.f32.xlu0 %v316_v42 }
 0x31d   :  { %v318_v43 = vpop.xlane.xlu0 %317 }
 0x31e   :  { %v319_v44 = vsub.f32 %v310_v38, %v318_v43 }
 0x320   :  { %v320_v45 = vmul.f32 1.442695, %v319_v44 }
 0x322   :  { %449 = vpow2.f32 %v320_v45 }
 0x32c   :  { %v450_v46 = vpop.eup %449 }
 0x32d   :  { %v322_v47 = vsel %vm315_vm2, %v450_v46, 0.0 }
 0x32e   :  { %323 = vadd.xlane.f32.xlu0 %v322_v47 }
 0x3bb   :  { %v324_v48 = vpop.xlane.xlu0 %323 }
 0x3bc   :  { %451 = vrcp.f32 %v324_v48 }
 0x3c6   :  { %v452_v49 = vpop.eup %451 }
 0x3c7   :  { %v326_v50 = vmul.f32 %v452_v49, %v450_v46 }
 0x3c9   :  { %327 = vst.msk [vmem:[#allocation2] sm:$0xf] %vm315_vm2, %v326_v50 }
 0x3ca   :  { %464 = shalt.err (!%p461_p4)
}
 0x3cb   :  { %s465_s16 = scalar_lea.hbm %s625_s7, 64 }
 0x3cc   :  { %p466_p5 = scmp.ne.s32.totalorder %s625_s7, %s465_s16  ;;  %p469_p6 = scmp.lt.u32.totalorder %s465_s16, %s625_s7 }
 0x3ce   :  { %p471_p7 = pnand %p469_p6, %p466_p5 }
 0x3d0   :  { %474 = shalt.err (!%p471_p7)
}
 0x3d1   :  { %337 = dma.vmem_to_hbm [thread:$0]  %s335_s5, 64, %s625_s7, [#allocation3]  }
 0x3d2   :  { %475 = dma.done.wait [#allocation3], 64  }
 0x3d3   :  { %476 = vsyncadd [#allocation3], 4294967232 }
 0x3d4   :  { %341 = vsyncpa [#allocation3], 1 }

</bundles_post_ra>
